<compile_context>
chip_gen: v5e
topology: v5e:2x2
jax: 0.10.0
libtpu: 0.0.40
codegen_flags: <defaults>
</compile_context>

<pallas_src>
import functools

import jax
import jax.numpy as jnp
from jax import lax
from jax.experimental import pallas as pl
from jax.experimental.pallas import tpu as pltpu


# ----------------------------- configuration ------------------------------- #
DIM = 32          # model dim
N_EXPERTS = 8     # n_experts
TOPK = 2          # n_activated_experts
TOKENS = 200      # number of tokens routed (x is (tokens, dim) in the module)
SCORE_FUNC = "softmax"
ROUTE_SCALE = 1.0


def gate_kernel(x_ref, w_ref, b_ref,
                weights_ref, indices_ref, sel_ref,
                *, topk, score_func, route_scale):
    """One token tile. Everything lives in the transposed (expert, token)
    layout so the token axis is the 128-lane axis (lane-dense stores)."""
    x = x_ref[...]                       # (tile_T, D) bf16 (native dtype)
    w = w_ref[...]                       # (E, D)      bf16
    bias = b_ref[...]                    # (E, 1)      f32

    # logits^T = W @ x^T : contract the last dim of both operands ("NT" matmul,
    # handled natively by the MXU), f32 accumulate.
    logits = lax.dot_general(
        w, x, dimension_numbers=(((1,), (1,)), ((), ())),
        preferred_element_type=jnp.float32)                     # (E, tile_T) f32

    if score_func == "softmax":
        m = jnp.max(logits, axis=0, keepdims=True)               # (1, tile_T)
        e = jnp.exp(logits - m)
        denom = jnp.sum(e, axis=0, keepdims=True)
        scores = e * pl.reciprocal(denom, approx=True)           # EUP vrcp
    else:  # 'sigmoid'
        scores = jax.nn.sigmoid(logits)

    original_scores = scores                                     # (E, tile_T)
    biased = scores + bias                                       # selection scores

    E, T = biased.shape
    expert_iota = lax.broadcasted_iota(jnp.int32, (E, T), 0)
    neg_inf = jnp.float32(-jnp.inf)
    sentinel = jnp.int32(E)                                      # > any valid id

    # Batched top-k over the expert (sublane) axis, all tokens at once.
    remaining = biased
    w_rows, idx_rows = [], []
    sel_counts = jnp.zeros((E, T), jnp.int32)
    for _ in range(topk):
        m_k = jnp.max(remaining, axis=0, keepdims=True)                      # (1, T)
        is_max = remaining == m_k
        idx_k = jnp.min(jnp.where(is_max, expert_iota, sentinel),
                        axis=0, keepdims=True)                               # (1, T)
        sel = expert_iota == idx_k                                           # one-hot (E, T)
        # gather of the original (un-biased) scores at the selected expert
        w_k = jnp.sum(jnp.where(sel, original_scores, 0.0),
                      axis=0, keepdims=True)                                 # (1, T)
        sel_counts = sel_counts + sel.astype(jnp.int32)
        remaining = jnp.where(sel, neg_inf, remaining)
        w_rows.append(w_k)
        idx_rows.append(idx_k)

    weights = jnp.concatenate(w_rows, axis=0)                    # (topk, T) f32
    indices = jnp.concatenate(idx_rows, axis=0)                  # (topk, T) i32

    if score_func == "sigmoid":
        weights = weights * pl.reciprocal(
            jnp.sum(weights, axis=0, keepdims=True), approx=True)
    weights = weights * jnp.float32(route_scale)

    weights_ref[...] = weights.astype(weights_ref.dtype)
    indices_ref[...] = indices
    sel_ref[...] = sel_counts


def _pick_token_tile(n_tokens, dim, itemsize):
    """Whole token range (rounded to a sublane multiple) if it fits a
    conservative per-buffer VMEM budget, otherwise a multiple of 128 rows."""
    budget = 8 * 1024 * 1024               # per x buffer; x is double-buffered
    max_rows = max(8, budget // max(1, dim * itemsize))
    if n_tokens <= min(max_rows, 1024):
        return -(-n_tokens // 8) * 8
    return max(128, min(1024, (max_rows // 128) * 128))


def gate_forward(x, gate_weight, bias, *,
                 topk=TOPK, score_func=SCORE_FUNC, route_scale=ROUTE_SCALE,
                 tile_t=None):
    """x: (T, D); gate_weight: (E, D) (PyTorch Linear layout); bias: (E,)."""
    T, D = x.shape
    E = gate_weight.shape[0]
    out_dtype = x.dtype                      # weights.type_as(x)

    # Feed the MXU bf16 operands (f32 accumulate happens in-kernel). If x is
    # already bf16 (the production case) this is a no-op: no extra HBM pass.
    x_mxu = x if x.dtype == jnp.bfloat16 else x.astype(jnp.bfloat16)
    w_mxu = gate_weight.astype(jnp.bfloat16)     # (E, D), tiny
    bias2d = bias.reshape(E, 1).astype(jnp.float32)

    if tile_t is None:
        tile_t = _pick_token_tile(T, D, x_mxu.dtype.itemsize)
    t_pad = pl.cdiv(T, tile_t) * tile_t
    if t_pad != T:
        x_mxu = jnp.pad(x_mxu, ((0, t_pad - T), (0, 0)))
    n_tiles = t_pad // tile_t

    kernel = functools.partial(gate_kernel, topk=topk,
                               score_func=score_func, route_scale=route_scale)

    weights_t, indices_t, sel_counts = pl.pallas_call(
        kernel,
        grid=(n_tiles,),
        out_shape=(jax.ShapeDtypeStruct((topk, t_pad), out_dtype),
                   jax.ShapeDtypeStruct((topk, t_pad), jnp.int32),
                   jax.ShapeDtypeStruct((E, t_pad), jnp.int32)),
        in_specs=[pl.BlockSpec((tile_t, D), lambda i: (i, 0)),   # x (streamed)
                  pl.BlockSpec((E, D), lambda i: (0, 0)),        # weight (resident)
                  pl.BlockSpec((E, 1), lambda i: (0, 0))],       # bias   (resident)
        out_specs=(pl.BlockSpec((topk, tile_t), lambda i: (0, i)),
                   pl.BlockSpec((topk, tile_t), lambda i: (0, i)),
                   pl.BlockSpec((E, tile_t), lambda i: (0, i))),
        compiler_params=pltpu.CompilerParams(
            dimension_semantics=("parallel",),
            vmem_limit_bytes=32 * 1024 * 1024),
    )(x_mxu, w_mxu, bias2d)

    # Tiny layout fix-ups wrapper-side (2*T / E*T elements, negligible vs x).
    weights = weights_t[:, :T].T                                   # (T, topk)
    indices = indices_t[:, :T].T                                   # (T, topk)
    token_counts = jnp.sum(sel_counts[:, :T], axis=1).astype(jnp.int32)  # (E,)
    return weights, indices, token_counts


if __name__ == "__main__":
    key = jax.random.PRNGKey(0)
    kx, kw, kb = jax.random.split(key, 3)

    # x in bf16 (realistic activation dtype -> no wrapper-side cast/HBM pass)
    x = jax.random.normal(kx, (TOKENS, DIM), jnp.float32).astype(jnp.bfloat16)
    # Linear(dim, n_experts, bias=False).weight has shape (E, D)
    gate_weight = jax.random.normal(kw, (N_EXPERTS, DIM), jnp.float32) * (DIM ** -0.5)
    bias = 0.1 * jax.random.normal(kb, (N_EXPERTS,), jnp.float32)

    # tile_t=128 -> 2 token tiles + padding: exercises the grid/pipelined path.
    weights, indices, counts = gate_forward(x, gate_weight, bias, tile_t=128)
    weights, indices, counts = jax.block_until_ready((weights, indices, counts))

    assert weights.shape == (TOKENS, TOPK)
    assert indices.shape == (TOKENS, TOPK)
    assert counts.shape == (N_EXPERTS,)
    assert weights.dtype == x.dtype                       # .type_as(x)
    assert bool(jnp.all(jnp.isfinite(weights.astype(jnp.float32))))
    assert bool(jnp.all((indices >= 0) & (indices < N_EXPERTS)))
    assert bool(jnp.all(indices[:, 0] != indices[:, 1]))  # k distinct experts

    # --- reference checks (pure JAX, mirroring the kernel's bf16 matmul) ----
    logits_ref = jnp.dot(x.astype(jnp.bfloat16),
                         gate_weight.astype(jnp.bfloat16).T,
                         preferred_element_type=jnp.float32)
    scores_ref = jax.nn.softmax(logits_ref, axis=-1)
    biased_ref = scores_ref + bias[None, :]

    # returned weights == original softmax scores gathered at kernel indices
    gathered = jnp.take_along_axis(scores_ref, indices, axis=1) * ROUTE_SCALE
    assert bool(jnp.allclose(gathered, weights.astype(jnp.float32), atol=3e-2)), \
        "weights mismatch"
    # selected biased scores match the reference top-k values (tie-robust)
    sel_vals = jnp.sort(jnp.take_along_axis(biased_ref, indices, axis=1), axis=-1)
    ref_vals = jnp.sort(jax.lax.top_k(biased_ref, TOPK)[0], axis=-1)
    assert bool(jnp.allclose(sel_vals, ref_vals, atol=3e-2)), "top-k mismatch"
    # token_counts == bincount of the selected indices
    counts_ref = jnp.zeros((N_EXPERTS,), jnp.int32).at[indices.reshape(-1)].add(1)
    assert bool(jnp.all(counts_ref == counts)), "token_counts mismatch"
    assert int(counts.sum()) == TOKENS * TOPK

    print("KERNEL_OK")
</pallas_src>

<mosaic_0001>
module attributes {stable_mosaic.version = 11 : i64} {
  func.func @gate_kernel(%arg0: i32, %arg1: memref<128x32xbf16, #tpu.memory_space<vmem>>, %arg2: memref<8x32xbf16, #tpu.memory_space<vmem>>, %arg3: memref<8x1xf32, #tpu.memory_space<vmem>>, %arg4: memref<2x128xbf16, #tpu.memory_space<vmem>>, %arg5: memref<2x128xi32, #tpu.memory_space<vmem>>, %arg6: memref<8x128xi32, #tpu.memory_space<vmem>>) attributes {dimension_semantics = [#tpu.dimension_semantics<parallel>], iteration_bounds = array<i64: 2>, scalar_prefetch = 0 : i64, scratch_operands = 0 : i64, tpu.core_type = #tpu.core_type<tc>, window_params = [{transform_indices = @transform_0, window_bounds = array<i64: 128, 32>}, {pipeline_mode = #tpu.pipeline_mode<synchronous>, transform_indices = @transform_1, window_bounds = array<i64: 8, 32>}, {pipeline_mode = #tpu.pipeline_mode<synchronous>, transform_indices = @transform_2, window_bounds = array<i64: 8, 1>}, {transform_indices = @transform_3, window_bounds = array<i64: 2, 128>}, {transform_indices = @transform_4, window_bounds = array<i64: 2, 128>}, {transform_indices = @transform_5, window_bounds = array<i64: 8, 128>}]} {
    %c0 = arith.constant 0 : index
    %c0_0 = arith.constant 0 : index
    %0 = vector.load %arg1[%c0, %c0_0] : memref<128x32xbf16, #tpu.memory_space<vmem>>, vector<128x32xbf16>
    %c0_1 = arith.constant 0 : index
    %c0_2 = arith.constant 0 : index
    %1 = vector.load %arg2[%c0_1, %c0_2] : memref<8x32xbf16, #tpu.memory_space<vmem>>, vector<8x32xbf16>
    %c0_3 = arith.constant 0 : index
    %c0_4 = arith.constant 0 : index
    %2 = vector.load %arg3[%c0_3, %c0_4] : memref<8x1xf32, #tpu.memory_space<vmem>>, vector<8x1xf32>
    %cst = arith.constant dense<0.000000e+00> : vector<8x128xf32>
    %3 = tpu.matmul %1, %0, %cst {dimension_numbers = #tpu.dot_dimension_numbers<[1], [1], [0], [0], [0, 0, 1, 0], [], []>} : vector<8x32xbf16>, vector<128x32xbf16>, vector<8x128xf32> -> vector<8x128xf32>
    %cst_5 = arith.constant dense<0xFF800000> : vector<128xf32>
    %4 = vector.multi_reduction <maximumf>, %3, %cst_5 [0] : vector<8x128xf32> to vector<128xf32>
    %5 = vector.shape_cast %4 : vector<128xf32> to vector<1x128xf32>
    %6 = vector.broadcast %5 : vector<1x128xf32> to vector<8x128xf32>
    %7 = arith.subf %3, %6 : vector<8x128xf32>
    %8 = math.exp %7 : vector<8x128xf32>
    %cst_6 = arith.constant dense<0.000000e+00> : vector<128xf32>
    %9 = vector.multi_reduction <add>, %8, %cst_6 [0] : vector<8x128xf32> to vector<128xf32>
    %10 = vector.shape_cast %9 : vector<128xf32> to vector<1x128xf32>
    %11 = tpu.reciprocal %10 {approx = true} : vector<1x128xf32> -> vector<1x128xf32>
    %12 = vector.broadcast %11 : vector<1x128xf32> to vector<8x128xf32>
    %13 = arith.mulf %8, %12 : vector<8x128xf32>
    %14 = vector.broadcast %2 : vector<8x1xf32> to vector<8x128xf32>
    %15 = arith.addf %13, %14 : vector<8x128xf32>
    %16 = tpu.iota {dimensions = array<i32: 0>} : vector<8x128xi32>
    %c0_i32 = arith.constant 0 : i32
    %17 = vector.broadcast %c0_i32 : i32 to vector<8x128xi32>
    %cst_7 = arith.constant dense<0xFF800000> : vector<128xf32>
    %18 = vector.multi_reduction <maximumf>, %15, %cst_7 [0] : vector<8x128xf32> to vector<128xf32>
    %19 = vector.shape_cast %18 : vector<128xf32> to vector<1x128xf32>
    %20 = vector.broadcast %19 : vector<1x128xf32> to vector<8x128xf32>
    %21 = arith.cmpf oeq, %15, %20 : vector<8x128xf32>
    %c8_i32 = arith.constant 8 : i32
    %22 = vector.broadcast %c8_i32 : i32 to vector<8x128xi32>
    %23 = arith.select %21, %16, %22 : vector<8x128xi1>, vector<8x128xi32>
    %cst_8 = arith.constant dense<2147483647> : vector<128xi32>
    %24 = vector.multi_reduction <minsi>, %23, %cst_8 [0] : vector<8x128xi32> to vector<128xi32>
    %25 = vector.shape_cast %24 : vector<128xi32> to vector<1x128xi32>
    %26 = vector.broadcast %25 : vector<1x128xi32> to vector<8x128xi32>
    %27 = arith.cmpi eq, %16, %26 : vector<8x128xi32>
    %cst_9 = arith.constant 0.000000e+00 : f32
    %28 = vector.broadcast %cst_9 : f32 to vector<8x128xf32>
    %29 = arith.select %27, %13, %28 : vector<8x128xi1>, vector<8x128xf32>
    %cst_10 = arith.constant dense<0.000000e+00> : vector<128xf32>
    %30 = vector.multi_reduction <add>, %29, %cst_10 [0] : vector<8x128xf32> to vector<128xf32>
    %31 = vector.shape_cast %30 : vector<128xf32> to vector<1x128xf32>
    %32 = arith.extui %27 : vector<8x128xi1> to vector<8x128xi32>
    %33 = arith.addi %17, %32 : vector<8x128xi32>
    %cst_11 = arith.constant 0xFF800000 : f32
    %34 = vector.broadcast %cst_11 : f32 to vector<8x128xf32>
    %35 = arith.select %27, %34, %15 : vector<8x128xi1>, vector<8x128xf32>
    %cst_12 = arith.constant dense<0xFF800000> : vector<128xf32>
    %36 = vector.multi_reduction <maximumf>, %35, %cst_12 [0] : vector<8x128xf32> to vector<128xf32>
    %37 = vector.shape_cast %36 : vector<128xf32> to vector<1x128xf32>
    %38 = vector.broadcast %37 : vector<1x128xf32> to vector<8x128xf32>
    %39 = arith.cmpf oeq, %35, %38 : vector<8x128xf32>
    %c8_i32_13 = arith.constant 8 : i32
    %40 = vector.broadcast %c8_i32_13 : i32 to vector<8x128xi32>
    %41 = arith.select %39, %16, %40 : vector<8x128xi1>, vector<8x128xi32>
    %cst_14 = arith.constant dense<2147483647> : vector<128xi32>
    %42 = vector.multi_reduction <minsi>, %41, %cst_14 [0] : vector<8x128xi32> to vector<128xi32>
    %43 = vector.shape_cast %42 : vector<128xi32> to vector<1x128xi32>
    %44 = vector.broadcast %43 : vector<1x128xi32> to vector<8x128xi32>
    %45 = arith.cmpi eq, %16, %44 : vector<8x128xi32>
    %cst_15 = arith.constant 0.000000e+00 : f32
    %46 = vector.broadcast %cst_15 : f32 to vector<8x128xf32>
    %47 = arith.select %45, %13, %46 : vector<8x128xi1>, vector<8x128xf32>
    %cst_16 = arith.constant dense<0.000000e+00> : vector<128xf32>
    %48 = vector.multi_reduction <add>, %47, %cst_16 [0] : vector<8x128xf32> to vector<128xf32>
    %49 = vector.shape_cast %48 : vector<128xf32> to vector<1x128xf32>
    %50 = arith.extui %45 : vector<8x128xi1> to vector<8x128xi32>
    %51 = arith.addi %33, %50 : vector<8x128xi32>
    %52 = tpu.concatenate %31, %49 in 0 : vector<1x128xf32>, vector<1x128xf32> -> vector<2x128xf32>
    %53 = tpu.concatenate %25, %43 in 0 : vector<1x128xi32>, vector<1x128xi32> -> vector<2x128xi32>
    %cst_17 = arith.constant 1.000000e+00 : f32
    %54 = vector.broadcast %cst_17 : f32 to vector<2x128xf32>
    %55 = arith.mulf %52, %54 : vector<2x128xf32>
    %56 = arith.truncf %55 : vector<2x128xf32> to vector<2x128xbf16>
    %c0_18 = arith.constant 0 : index
    %c0_19 = arith.constant 0 : index
    %57 = vector.load %arg4[%c0_18, %c0_19] : memref<2x128xbf16, #tpu.memory_space<vmem>>, vector<2x128xbf16>
    tpu.vector_store %arg4[%c0_18, %c0_19], %56 {strides = array<i32>} : memref<2x128xbf16, #tpu.memory_space<vmem>>, vector<2x128xbf16>,
    %c0_20 = arith.constant 0 : index
    %c0_21 = arith.constant 0 : index
    %58 = vector.load %arg5[%c0_20, %c0_21] : memref<2x128xi32, #tpu.memory_space<vmem>>, vector<2x128xi32>
    tpu.vector_store %arg5[%c0_20, %c0_21], %53 {strides = array<i32>} : memref<2x128xi32, #tpu.memory_space<vmem>>, vector<2x128xi32>,
    %c0_22 = arith.constant 0 : index
    %c0_23 = arith.constant 0 : index
    %59 = vector.load %arg6[%c0_22, %c0_23] : memref<8x128xi32, #tpu.memory_space<vmem>>, vector<8x128xi32>
    tpu.vector_store %arg6[%c0_22, %c0_23], %51 {strides = array<i32>} : memref<8x128xi32, #tpu.memory_space<vmem>>, vector<8x128xi32>,
    return
  }
  func.func @transform_0(%arg0: i32) -> (i32, i32) {
    %c0_i32 = arith.constant 0 : i32
    %c0_i32_0 = arith.constant 0 : i32
    return %arg0, %c0_i32 : i32, i32
  }
  func.func @transform_1(%arg0: i32) -> (i32, i32) {
    %c0_i32 = arith.constant 0 : i32
    %c0_i32_0 = arith.constant 0 : i32
    %c0_i32_1 = arith.constant 0 : i32
    return %c0_i32, %c0_i32_0 : i32, i32
  }
  func.func @transform_2(%arg0: i32) -> (i32, i32) {
    %c0_i32 = arith.constant 0 : i32
    %c0_i32_0 = arith.constant 0 : i32
    %c0_i32_1 = arith.constant 0 : i32
    return %c0_i32, %c0_i32_0 : i32, i32
  }
  func.func @transform_3(%arg0: i32) -> (i32, i32) {
    %c0_i32 = arith.constant 0 : i32
    %c0_i32_0 = arith.constant 0 : i32
    return %c0_i32, %arg0 : i32, i32
  }
  func.func @transform_4(%arg0: i32) -> (i32, i32) {
    %c0_i32 = arith.constant 0 : i32
    %c0_i32_0 = arith.constant 0 : i32
    return %c0_i32, %arg0 : i32, i32
  }
  func.func @transform_5(%arg0: i32) -> (i32, i32) {
    %c0_i32 = arith.constant 0 : i32
    %c0_i32_0 = arith.constant 0 : i32
    return %c0_i32, %arg0 : i32, i32
  }
}

</mosaic_0001>

<bundles_post_ra>
// kernel: tpu_custom_call.1
= control target key start
LH: loop header
LB: loop body
LE: loop exit
PB: predicated region body
PF: predicated region fallthrough
CT: control target
= control target key end

     0   :  { %11 = vsyncpa [#allocation3], 0  ;;  %s1027_s0 = inlined_call_operand.vmem [shape: bf16[256,32], index: 0, kind: input, shape index: {}]   ;;  %s1028_s1 = inlined_call_operand.vmem [shape: bf16[8,32], index: 1, kind: input, shape index: {}]   ;;  %s1029_s2 = inlined_call_operand.vmem [shape: f32[8,1], index: 2, kind: input, shape index: {}]   ;;  %s1030_s3 = inlined_call_operand.hbm [shape: bf16[2,256], index: 3, kind: output, shape index: {0}]   ;;  %s1031_s4 = inlined_call_operand.hbm [shape: s32[2,256], index: 4, kind: output, shape index: {1}]   ;;  %s1032_s5 = inlined_call_operand.hbm [shape: s32[8,256], index: 5, kind: output, shape index: {2}]  }
   0x1   :  { %13 = vsyncpa [#allocation3 + $0x1], 0 }
   0x2   :  { %14 = vsyncpa [#allocation5], 0 }
   0x3   :  { %16 = vsyncpa [#allocation5 + $0x1], 0  ;;  %s861_s18 = smov 0   ;;  %s863_s19 = smov 0  }
   0x4   :  { %s865_s20 = smov 0   ;;  %s867_s21 = smov 0  }
   0x5 LB: > { %s882_s22 = sadd.s32 4294967295, %s828_s21   ;;  %s1033_s23 = sadd.s32 4294967294, %s828_s21   ;;  %s828_s21 = sphi %s867_s21, %s1040_s21   ;;  %s824_s20 = sphi %s865_s20, %s1039_s20   ;;  %s820_s19 = sphi %s863_s19, %s1038_s19   ;;  %s816_s18 = sphi %s861_s18, %s1037_s18  }
   0x6   : > { %s886_s24 = sadd.s32 1, %s828_s21   ;;  %s97_s25 = sadd.s32 1, %s824_s20 }
   0x7   : > { %s94_s26 = ssub.s32 %s828_s21, %s886_s24  ;;  %p107_p0 = scmp.ne.s32.totalorder %s824_s20, %s820_s19 }
   0x8   : > { %p95_p1 = scmp.eq.s32.totalorder %s94_s26, 0  ;;  %p108_p2 = scmp.eq.s32.totalorder %s882_s22, 1 }
   0x9   : > { %p113_p3 = scmp.ne.s32.totalorder %s820_s19, %s816_s18  ;;  %p114_p4 = scmp.eq.s32.totalorder %s1033_s23, 1 }
   0xa   : > { %s899_s27 = scalar_select %p95_p1, %s824_s20, %s97_s25  }
   0xb   : > { %p901_p5 = por %p108_p2, %p107_p0  ;;  %p905_p6 = por %p114_p4, %p113_p3 }
   0xc   : > { %p599_p7 = scmp.ge.s32.totalorder %s828_s21, 1  ;;  %p199_p8 = scmp.lt.s32.totalorder %s828_s21, 3 }
   0xe   : > { %p200_p9 = pnand %p599_p7, %p199_p8 }
   0xf   : > { %s602_s30 = sshll.u32 (!%p200_p9), %s882_s22, 4  ;;  %s936_s14 = sand.u32 (!%p200_p9), 1, %s820_s19  }
  0x10   : > { %203 = sbr.rel (%p200_p9) target bundleno = 346 (0x15a), region = 32  ;;  %p237_p10 = scmp.lt.s32.totalorder (!%p200_p9), %s602_s30, 31 }
  0x11   : > { %s639_s15 = sshll.u32 (!%p200_p9), %s882_s22, 1  ;;  %s600_s16 = sshll.u32 (!%p200_p9), %s936_s14, 1 }
  0x12   : > { %s640_s17 = sshll.u32 (!%p200_p9), %s882_s22, 3  ;;  %s601_s7 = sshll.u32 (!%p200_p9), %s936_s14, 3 }
  0x13   : > { %s474_s10 = scalar_lea.hbm (!%p200_p9), %s1032_s5, %s640_s17  ;;  %s228_s11 = scalar_lea.vmem (!%p200_p9), [#allocation4], %s600_s16 }
  0x14   : > { %s462_s12 = sshll.u32 (!%p200_p9), %s228_s11, 4  ;;  %s951_s23 = scalar_lea.vmem (!%p200_p9), [#allocation6], %s601_s7  ;;  %s463_s12 = int_to_ptr.vmem [resolvable:$true] %s462_s12 }
  0x15   : > { %s1042_s30 = smov (!%p237_p10, %s602_s30), 31  ;;  %vm300_vm0 = vcmask 261120   ;;  %v259_v10 = vld [vmem:[%s1029_s2] sm:$0xff]  ;;  %v830_v11 = vmov 0   ;;  %v364_v43 = vlaneseq  ;;  %vm420_vm9 = vcmask 1040384   ;;  %s476_s25 = sshll.u32 %s951_s23, 4  ;;  %s959_s25 = int_to_ptr.vmem [resolvable:$true] %s476_s25 }
  0x16   : > { %s603_s6 = sshll.u32 %s1042_s30, 2  ;;  %701 = vset.pattern.permute.xlu0 %v830_v11  ;;  %v258_v18 = vld [vmem:[%s1028_s1] sm:$0xf]  ;;  %s460_s30 = scalar_lea.hbm %s1031_s4, %s639_s15 }
  0x17   : > { %s240_s9 = scalar_lea.vmem %s1027_s0, %s603_s6  ;;  %360 = vperm.xlu0 %701, %v259_v10   ;;  %v365_v46 = vshrl.u32 %v364_v43, 7  ;;  %s431_s6 = sand.u32 1, %s882_s22  }
  0x18   : > { %v650_v0 = vld [vmem:[%s240_s9 + $0x38] sm:$0xff]  ;;  %v649_v2 = vld [vmem:[%s240_s9 + $0x30] sm:$0xff]  ;;  %v648_v4 = vld [vmem:[%s240_s9 + $0x28] sm:$0xff]  ;;  %s464_s13 = sshll.u32 %s460_s30, 4  ;;  %s478_s15 = sshll.u32 %s474_s10, 4  ;;  %s465_s13 = int_to_ptr.hbm [resolvable:$true] %s464_s13  ;;  %s961_s15 = int_to_ptr.hbm [resolvable:$true] %s478_s15 }
  0x19   : > { %v326_v1 = vsel %vm300_vm0, %v650_v0, 0  ;;  %v323_v3 = vsel %vm300_vm0, %v649_v2, 0  ;;  %v320_v5 = vsel %vm300_vm0, %v648_v4, 0  ;;  %v647_v6 = vld [vmem:[%s240_s9 + $0x20] sm:$0xff]  ;;  %v646_v8 = vld [vmem:[%s240_s9 + $0x18] sm:$0xff]  ;;  %v645_v12 = vld [vmem:[%s240_s9 + $0x10] sm:$0xff] }
  0x1a   : > { %328 = vmatpush.bf16.xpose.msra.mxu0 %v326_v1  ;;  %v317_v7 = vsel %vm300_vm0, %v647_v6, 0  ;;  %v314_v9 = vsel %vm300_vm0, %v646_v8, 0  ;;  %v311_v13 = vsel %vm300_vm0, %v645_v12, 0  ;;  %v644_v14 = vld [vmem:[%s240_s9 + $0x8] sm:$0xff]  ;;  %v643_v16 = vld [vmem:[%s240_s9] sm:$0xff]  ;;  %s963_s16 = scalar_lea.sflag [#allocation5], %s431_s6 }
  0x1b   : > { %v308_v15 = vsel %vm300_vm0, %v644_v14, 0  ;;  %v305_v17 = vsel %vm300_vm0, %v643_v16, 0  ;;  %s720_s17 = sshra.s32 %s465_s13, 4  ;;  %s726_s8 = scalar_lea.hbm %s1031_s4, 4  ;;  %s721_s17 = int_to_ptr.hbm [resolvable:$true] %s720_s17 }
  0x1c   : > { %s722_s26 = scalar_lea.hbm %s721_s17, 2  ;;  %p727_p0 = scmp.lt.s32.totalorder %s721_s17, %s1031_s4 }
  0x1d   : > { %p723_p11 = scmp.ne.s32.totalorder %s721_s17, %s722_s26  ;;  %p728_p1 = scmp.lt.s32.totalorder %s726_s8, %s722_s26 }
  0x1f   : > { %p724_p12 = pnand %p723_p11, %p901_p5  ;;  %p729_p2 = por %p728_p1, %p727_p0 }
  0x21   : > { %p725_p13 = pneg %p724_p12 }
  0x22   : > { %329 = vmatpush.bf16.xpose.msra.mxu0 %v323_v3 }
  0x23   : > { %p730_p3 = pnand %p729_p2, %p725_p13 }
  0x2a   : > { %330 = vmatpush.bf16.xpose.msra.mxu0 %v320_v5 }
  0x32   : > { %331 = vmatpush.bf16.xpose.msra.mxu0 %v317_v7 }
  0x3a   : > { %332 = vmatpush.bf16.xpose.msra.mxu0 %v314_v9 }
  0x42   : > { %333 = vmatpush.bf16.xpose.msra.mxu0 %v311_v13 }
  0x4a   : > { %334 = vmatpush.bf16.xpose.msra.mxu0 %v308_v15 }
  0x52   : > { %335 = vmatpush.bf16.xpose.msra.mxu0 %v305_v17 }
  0x59   : > { %636 = vmatmul.msk.bf16.vlgmr.msra.gmra.mxu0 %vm300_vm0, %v258_v18 }
  0x89   : > { %v361_v37 = vpop.permute.xlu0 %360 }
  0xd6   : > { %v337_v19 = vpop.f32.mrf.mxu0 }
  0xd7   : > { %v341_v20 = vrot.slane %v337_v19, 4 }
  0xd9   : > { %v342_v21 = vmax.f32 %v337_v19, %v341_v20 }
  0xdb   : > { %v343_v22 = vrot.slane %v342_v21, 2 }
  0xdd   : > { %v344_v23 = vmax.f32 %v342_v21, %v343_v22 }
  0xde   : > { %v339_v24 = vpop.f32.mrf.mxu0 }
  0xdf   : > { %v345_v25 = vrot.slane %v344_v23, 1 }
  0xe1   : > { %v346_v26 = vmax.f32 %v344_v23, %v345_v25 }
  0xe3   : > { %v347_v27 = vsub.f32 %v337_v19, %v346_v26 }
  0xe5   : > { %v348_v28 = vmul.f32 1.442695, %v347_v27 }
  0xe7   : > { %702 = vpow2.f32 %v348_v28 }
  0xed   : > { %v703_v29 = vpop.eup %702 }
  0xee   : > { %v350_v30 = vrot.slane %v703_v29, 4 }
  0xf0   : > { %v351_v31 = vadd.f32 %v703_v29, %v350_v30 }
  0xf2   : > { %v352_v32 = vrot.slane %v351_v31, 2 }
  0xf4   : > { %v353_v33 = vadd.f32 %v352_v32, %v351_v31 }
  0xf6   : > { %v354_v34 = vrot.slane %v353_v33, 1 }
  0xf8   : > { %v355_v35 = vadd.f32 %v354_v34, %v353_v33 }
  0xfa   : > { %704 = vrcp.f32 %v355_v35 }
 0x100   : > { %v705_v36 = vpop.eup %704 }
 0x101   : > { %v931_v38 = vmul.f32 %v705_v36, %v703_v29 }
 0x103   : > { %v363_v39 = vadd.f32 %v361_v37, %v931_v38 }
 0x105   : > { %v366_v40 = vrot.slane %v363_v39, 4 }
 0x107   : > { %v367_v41 = vmax.f32 %v363_v39, %v366_v40 }
 0x109   : > { %v368_v42 = vrot.slane %v367_v41, 2 }
 0x10b   : > { %v369_v44 = vmax.f32 %v367_v41, %v368_v42 }
 0x10d   : > { %v370_v45 = vrot.slane %v369_v44, 1 }
 0x10f   : > { %v371_v47 = vmax.f32 %v369_v44, %v370_v45 }
 0x111   : > { %vm372_vm1 = vcmp.eq.f32.partialorder %v363_v39, %v371_v47 }
 0x112   : > { %v373_v48 = vsel %vm372_vm1, %v365_v46, 8 }
 0x113   : > { %v374_v49 = vrot.slane %v373_v48, 4 }
 0x115   : > { %vm375_vm2 = vcmp.lt.s32.totalorder %v373_v48, %v374_v49 }
 0x116   : > { %v376_v50 = vsel %vm375_vm2, %v373_v48, %v374_v49 }
 0x117   : > { %v377_v51 = vrot.slane %v376_v50, 2 }
 0x119   : > { %vm378_vm3 = vcmp.lt.s32.totalorder %v376_v50, %v377_v51 }
 0x11a   : > { %v379_v52 = vsel %vm378_vm3, %v376_v50, %v377_v51 }
 0x11b   : > { %v380_v53 = vrot.slane %v379_v52, 1 }
 0x11d   : > { %vm381_vm4 = vcmp.lt.s32.totalorder %v379_v52, %v380_v53 }
 0x11e   : > { %v382_v54 = vsel %vm381_vm4, %v379_v52, %v380_v53 }
 0x11f   : > { %vm383_vm5 = vcmp.eq.s32.totalorder %v365_v46, %v382_v54 }
 0x120   : > { %v392_v55 = vsel %vm383_vm5, -inf, %v363_v39  ;;  %v384_v0 = vsel %vm383_vm5, %v931_v38, 0.0  ;;  %v391_v12 = vsel %vm383_vm5, 1, %v830_v11 }
 0x121   : > { %v393_v56 = vrot.slane %v392_v55, 4  ;;  %v385_v2 = vrot.slane %v384_v0, 4 }
 0x123   : > { %v394_v57 = vmax.f32 %v392_v55, %v393_v56  ;;  %v386_v5 = vadd.f32 %v385_v2, %v384_v0 }
 0x125   : > { %v395_v58 = vrot.slane %v394_v57, 2  ;;  %v387_v8 = vrot.slane %v386_v5, 2 }
 0x127   : > { %v396_v59 = vmax.f32 %v394_v57, %v395_v58 }
 0x129   : > { %v397_v60 = vrot.slane %v396_v59, 1 }
 0x12b   : > { %v398_v61 = vmax.f32 %v396_v59, %v397_v60 }
 0x12d   : > { %vm399_vm6 = vcmp.eq.f32.partialorder %v392_v55, %v398_v61 }
 0x12e   : > { %v400_v62 = vsel %vm399_vm6, %v365_v46, 8 }
 0x12f   : > { %v401_v63 = vrot.slane %v400_v62, 4 }
 0x131   : > { %vm402_vm7 = vcmp.lt.s32.totalorder %v400_v62, %v401_v63 }
 0x132   : > { %v403_v1 = vsel %vm402_vm7, %v400_v62, %v401_v63 }
 0x133   : > { %v404_v3 = vrot.slane %v403_v1, 2 }
 0x135   : > { %vm405_vm8 = vcmp.lt.s32.totalorder %v403_v1, %v404_v3 }
 0x136   : > { %v406_v4 = vsel %vm405_vm8, %v403_v1, %v404_v3 }
 0x137   : > { %v407_v6 = vrot.slane %v406_v4, 1 }
 0x139   : > { %vm408_vm10 = vcmp.lt.s32.totalorder %v406_v4, %v407_v6 }
 0x13a   : > { %v409_v7 = vsel %vm408_vm10, %v406_v4, %v407_v6 }
 0x13b   : > { %vm410_vm11 = vcmp.eq.s32.totalorder %v365_v46, %v409_v7  ;;  %v422_v9 = vsel %vm420_vm9, %v382_v54, %v409_v7 }
 0x13c   : > { %v411_v10 = vsel %vm410_vm11, %v931_v38, 0.0  ;;  %425 = vst [vmem:[%s228_s11] sm:$0x3] %v422_v9  ;;  %v418_v13 = vsel %vm410_vm11, 1, %v830_v11 }
 0x13d   : > { %v412_v14 = vrot.slane %v411_v10, 4 }
 0x13e   : > { %733 = shalt.err (!%p730_p3)
}
 0x13f   : > { %652 = dma.vmem_to_hbm [thread:$0]  (%p901_p5), %s463_s12, 32, %s465_s13, %s963_s16   ;;  %v419_v11 = vadd.s32 %v418_v13, %v391_v12  ;;  %v413_v15 = vadd.f32 %v412_v14, %v411_v10  ;;  %v388_v16 = vadd.f32 %v387_v8, %v386_v5 }
 0x140   : > { %s748_s6 = sshra.s32 %s961_s15, 4  ;;  %s754_s30 = scalar_lea.hbm %s1032_s5, 16  ;;  %s749_s6 = int_to_ptr.hbm [resolvable:$true] %s748_s6 }
 0x141   : > { %426 = vst [vmem:[%s951_s23] sm:$0xff] %v419_v11  ;;  %s750_s11 = scalar_lea.hbm %s749_s6, 8  ;;  %p755_p9 = scmp.lt.s32.totalorder %s749_s6, %s1032_s5 }
 0x142   : > { %p751_p4 = scmp.ne.s32.totalorder %s749_s6, %s750_s11  ;;  %p756_p10 = scmp.lt.s32.totalorder %s754_s30, %s750_s11 }
 0x144   : > { %p752_p7 = pnand %p751_p4, %p901_p5  ;;  %p757_p11 = por %p756_p10, %p755_p9 }
 0x146   : > { %p753_p8 = pneg %p752_p7 }
 0x148   : > { %p758_p12 = pnand %p757_p11, %p753_p8 }
 0x14a   : > { %761 = shalt.err (!%p758_p12)
}
 0x14b   : > { %653 = dma.vmem_to_hbm [thread:$0]  (%p901_p5), %s959_s25, 128, %s961_s15, %s963_s16   ;;  %v414_v17 = vrot.slane %v413_v15, 2  ;;  %v389_v19 = vrot.slane %v388_v16, 1 }
 0x14c   : > { %s446_s13 = scalar_lea.hbm %s1030_s3, %s882_s22  ;;  %s221_s9 = scalar_lea.vmem [#allocation2], %s936_s14 }
 0x14d   : > { %v415_v18 = vadd.f32 %v414_v17, %v413_v15  ;;  %v390_v21 = vadd.f32 %v389_v19, %v388_v16  ;;  %s448_s10 = sshll.u32 %s221_s9, 4  ;;  %s450_s6 = sshll.u32 %s446_s13, 4  ;;  %s449_s10 = int_to_ptr.vmem [resolvable:$true] %s448_s10  ;;  %s451_s6 = int_to_ptr.hbm [resolvable:$true] %s450_s6 }
 0x14e   : > { %s428_s25 = scalar_lea.sflag [#allocation3], %s936_s14  ;;  %s776_s15 = sshra.s32 %s451_s6, 4  ;;  %s777_s15 = int_to_ptr.hbm [resolvable:$true] %s776_s15 }
 0x14f   : > { %v416_v20 = vrot.slane %v415_v18, 1  ;;  %s778_s16 = scalar_lea.hbm %s777_s15, 1  ;;  %s782_s17 = scalar_lea.hbm %s1030_s3, 2 }
 0x150   : > { %p779_p13 = scmp.ne.s32.totalorder %s777_s15, %s778_s16  ;;  %p783_p2 = scmp.lt.s32.totalorder %s777_s15, %s1030_s3 }
 0x151   : > { %v417_v22 = vadd.f32 %v416_v20, %v415_v18  ;;  %p784_p3 = scmp.lt.s32.totalorder %s782_s17, %s778_s16 }
 0x152   : > { %p780_p0 = pnand %p779_p13, %p901_p5 }
 0x153   : > { %v421_v23 = vsel %vm420_vm9, %v390_v21, %v417_v22  ;;  %p785_p4 = por %p784_p3, %p783_p2 }
 0x154   : > { %v423_v24 = vpack.c.bf16 %v421_v23, %v421_v23  ;;  %p781_p1 = pneg %p780_p0 }
 0x156   : > { %424 = vst [vmem:[%s221_s9] sm:$0x1] %v423_v24  ;;  %p786_p7 = pnand %p785_p4, %p781_p1 }
 0x158   : > { %789 = shalt.err (!%p786_p7)
}
 0x159   : > { %651 = dma.vmem_to_hbm [thread:$0]  (%p901_p5), %s449_s10, 16, %s451_s6, %s428_s25  }
 0x15a PF: > { %p667_p8 = scmp.ge.s32.totalorder %s828_s21, 2  ;;  %s490_s14 = sand.u32 1, %s816_s18  }
 0x15b   : > { %s491_s7 = scalar_lea.sflag [#allocation3], %s490_s14 }
 0x15c   : > { %p658_p9 = pnand %p667_p8, %p905_p6 }
 0x15e   : > { %p659_p10 = pneg %p658_p9 }
 0x160   : > { %807 = dma.done.wait (%p659_p10), %s491_s7, 16  }
 0x161   : > { %809 = vsyncadd (%p659_p10), %s491_s7, 4294967280  ;;  %s1036_s8 = sadd.s32 4294967294, %s828_s21  }
 0x162   : > { %s499_s23 = sand.u32 1, %s1036_s8  }
 0x163   : > { %s500_s12 = scalar_lea.sflag [#allocation5], %s499_s23 }
 0x164   : > { %811 = dma.done.wait (%p659_p10), %s500_s12, 160  }
 0x165   : > { %813 = vsyncadd (%p659_p10), %s500_s12, 4294967136  ;;  %p19_p5 = scmp.ge.s32.totalorder %s886_s24, 4   ;;  %s1037_s18 = smov %s820_s19 }
 0x166   : > { %s1038_s19 = smov %s824_s20  ;;  %s1039_s20 = smov %s899_s27 }
 0x167   : > { %s1040_s21 = smov %s886_s24  ;;  %21 = sbr.rel (!%p19_p5) target bundleno = 5 (0x5), region = 99 }
 0x16c   :  { %516 = vsyncpa [#allocation3], 1 }
 0x16d   :  { %518 = vsyncpa [#allocation3 + $0x1], 1 }
 0x16e   :  { %519 = vsyncpa [#allocation5], 1 }
 0x16f   :  { %521 = vsyncpa [#allocation5 + $0x1], 1 }

</bundles_post_ra>
